<compile_context>
chip_gen: v7x
topology: tpu7x:2x2x1
jax: 0.10.0
libtpu: 0.0.40
codegen_flags: <defaults>
</compile_context>

<pallas_src>
import jax
import jax.numpy as jnp
from jax.experimental import pallas as pl
from jax.experimental.pallas import tpu as pltpu


def ffn_kernel(x_ref, w1_ref, b1_ref, w2_ref, b2_ref, o_ref, acc_ref):
    # x_ref:  (tm, d_model)     w1_ref: (d_model, tff)   b1_ref: (1, tff)
    # w2_ref: (tff, d_model)    b2_ref: (1, d_model)
    # o_ref:  (tm, d_model)     acc_ref: (tm, d_model) f32 scratch
    k = pl.program_id(1)

    @pl.when(k == 0)
    def _init():
        # Seed the accumulator with b2 so the output bias is added exactly once.
        acc_ref[...] = jnp.broadcast_to(
            b2_ref[...].astype(jnp.float32), acc_ref.shape)

    # First matmul: (tm, d_model) @ (d_model, tff) -> (tm, tff), f32 accumulate.
    h = jnp.dot(x_ref[...], w1_ref[...], preferred_element_type=jnp.float32)
    # Bias + ReLU in f32; dropout == identity (inference).
    h = jnp.maximum(h + b1_ref[...].astype(jnp.float32), 0.0)
    # Second matmul: (tm, tff) @ (tff, d_model) accumulated into scratch.
    acc_ref[...] += jnp.dot(h.astype(w2_ref.dtype), w2_ref[...],
                            preferred_element_type=jnp.float32)

    @pl.when(k == pl.num_programs(1) - 1)
    def _finalize():
        o_ref[...] = acc_ref[...].astype(o_ref.dtype)


def _pick_tff(d_ff, tff):
    """Largest hidden-dim tile <= tff that divides d_ff and is lane-friendly."""
    tff = min(int(tff), d_ff)
    if d_ff % tff == 0 and (tff % 128 == 0 or tff == d_ff):
        return tff
    for t in range((tff // 128) * 128, 0, -128):
        if d_ff % t == 0:
            return t
    return d_ff


def feed_forward(x, w1, b1, w2, b2, *, tm=256, tff=512, mxu_dtype=None):
    """x: (batch, seq, d_model). w1: (d_model, d_ff), w2: (d_ff, d_model)."""
    batch, seq, d_model = x.shape
    d_ff = w1.shape[1]
    M = batch * seq
    out_dtype = x.dtype

    # Optional bf16 MXU inputs (recommended for real shapes); math stays f32.
    if mxu_dtype is not None:
        x, w1, w2 = (a.astype(mxu_dtype) for a in (x, w1, w2))
    b1_2d = b1.reshape(1, d_ff).astype(jnp.float32)
    b2_2d = b2.reshape(1, d_model).astype(jnp.float32)

    # Row tile: multiple of 16 (covers f32 and bf16 sublane packing), clamped to
    # the (16-rounded) row count so tiny inputs don't over-pad.
    tm = max(16, min(int(tm), ((M + 15) // 16) * 16))
    num_m = pl.cdiv(M, tm)
    m_pad = num_m * tm

    tff = _pick_tff(d_ff, tff)
    num_k = d_ff // tff

    x2d = x.reshape(M, d_model)
    if m_pad != M:
        x2d = jnp.pad(x2d, ((0, m_pad - M), (0, 0)))

    itemsize = jnp.dtype(x2d.dtype).itemsize
    out_itemsize = jnp.dtype(out_dtype).itemsize
    flops = 4 * M * d_model * d_ff  # two matmuls, 2*M*N*K each
    bytes_accessed = int(
        m_pad * d_model * itemsize                      # x
        + num_m * 2 * d_model * d_ff * itemsize         # W1 + W2 per row tile
        + (d_ff + d_model) * 4                          # biases
        + m_pad * d_model * out_itemsize)               # output

    # Rough double-buffered VMEM footprint -> explicit scoped limit (<= 64 MiB
    # so a config that fits v5e/v6e also fits v7x's per-TC VMEM).
    vmem_need = 2 * (tm * d_model * itemsize            # x tiles
                     + d_model * tff * itemsize         # W1 tiles
                     + tff * d_model * itemsize         # W2 tiles
                     + (tff + d_model) * 4              # biases
                     + tm * d_model * out_itemsize)     # out tiles
    vmem_need += tm * d_model * 4                       # accumulator scratch
    vmem_limit = int(min(max(2 * vmem_need, 32 * 1024 * 1024), 64 * 1024 * 1024))

    out2d = pl.pallas_call(
        ffn_kernel,
        out_shape=jax.ShapeDtypeStruct((m_pad, d_model), out_dtype),
        grid_spec=pltpu.PrefetchScalarGridSpec(
            num_scalar_prefetch=0,
            grid=(num_m, num_k),                                  # reduction last
            in_specs=[
                pl.BlockSpec((tm, d_model), lambda i, k: (i, 0)),    # x rows
                pl.BlockSpec((d_model, tff), lambda i, k: (0, k)),   # W1 slice
                pl.BlockSpec((1, tff), lambda i, k: (0, k)),         # b1 slice
                pl.BlockSpec((tff, d_model), lambda i, k: (k, 0)),   # W2 slice
                pl.BlockSpec((1, d_model), lambda i, k: (0, 0)),     # b2
            ],
            out_specs=pl.BlockSpec((tm, d_model), lambda i, k: (i, 0)),
            scratch_shapes=[pltpu.VMEM((tm, d_model), jnp.float32)],
        ),
        compiler_params=pltpu.CompilerParams(
            dimension_semantics=("parallel", "arbitrary"),
            vmem_limit_bytes=vmem_limit,
        ),
        cost_estimate=pl.CostEstimate(
            flops=flops, transcendentals=0, bytes_accessed=bytes_accessed),
    )(x2d, w1, b1_2d, w2, b2_2d)

    return out2d[:M].reshape(batch, seq, d_model)


if __name__ == "__main__":
    # Small shapes consistent with the module: batch=2, seq=8, d_model=32, d_ff=64
    batch, seq, d_model, d_ff = 2, 8, 32, 64

    key = jax.random.PRNGKey(0)
    kx, kw1, kb1, kw2, kb2 = jax.random.split(key, 5)

    x = jax.random.normal(kx, (batch, seq, d_model), dtype=jnp.float32)

    # Deterministic init mimicking nn.Linear's uniform(-1/sqrt(fan_in), 1/sqrt(fan_in)).
    lim1 = 1.0 / (d_model ** 0.5)
    lim2 = 1.0 / (d_ff ** 0.5)
    # Stored as (in_features, out_features) so kernel computes x @ W + b.
    w1 = jax.random.uniform(kw1, (d_model, d_ff), jnp.float32, -lim1, lim1)
    b1 = jax.random.uniform(kb1, (d_ff,), jnp.float32, -lim1, lim1)
    w2 = jax.random.uniform(kw2, (d_ff, d_model), jnp.float32, -lim2, lim2)
    b2 = jax.random.uniform(kb2, (d_model,), jnp.float32, -lim2, lim2)

    # Pure-JAX reference (linear -> relu -> (dropout=id) -> linear).
    ref = jnp.maximum(x @ w1 + b1, 0.0) @ w2 + b2

    # f32 MXU inputs: tight correctness check.
    out_f32 = jax.block_until_ready(feed_forward(x, w1, b1, w2, b2))
    assert out_f32.shape == (batch, seq, d_model)
    assert jnp.allclose(out_f32, ref, atol=1e-5, rtol=1e-5)

    # bf16 MXU inputs (f32 accumulate / bias / ReLU): looser check.
    out_bf16 = jax.block_until_ready(
        feed_forward(x, w1, b1, w2, b2, mxu_dtype=jnp.bfloat16))
    assert out_bf16.shape == (batch, seq, d_model)
    assert jnp.allclose(out_bf16, ref, atol=5e-2, rtol=5e-2)

    print("KERNEL_OK")
</pallas_src>

<mosaic_0001>
module attributes {stable_mosaic.version = 11 : i64} {
  func.func @ffn_kernel(%arg0: i32, %arg1: i32, %arg2: memref<16x32xf32, #tpu.memory_space<vmem>>, %arg3: memref<32x64xf32, #tpu.memory_space<vmem>>, %arg4: memref<1x64xf32, #tpu.memory_space<vmem>>, %arg5: memref<64x32xf32, #tpu.memory_space<vmem>>, %arg6: memref<1x32xf32, #tpu.memory_space<vmem>>, %arg7: memref<16x32xf32, #tpu.memory_space<vmem>>, %arg8: memref<16x32xf32, #tpu.memory_space<vmem>>) attributes {dimension_semantics = [#tpu.dimension_semantics<parallel>, #tpu.dimension_semantics<arbitrary>], iteration_bounds = array<i64: 1, 1>, scalar_prefetch = 0 : i64, scratch_operands = 1 : i64, tpu.core_type = #tpu.core_type<tc>, window_params = [{transform_indices = @transform_0, window_bounds = array<i64: 16, 32>}, {transform_indices = @transform_1, window_bounds = array<i64: 32, 64>}, {transform_indices = @transform_2, window_bounds = array<i64: 1, 64>}, {transform_indices = @transform_3, window_bounds = array<i64: 64, 32>}, {pipeline_mode = #tpu.pipeline_mode<synchronous>, transform_indices = @transform_4, window_bounds = array<i64: 1, 32>}, {transform_indices = @transform_5, window_bounds = array<i64: 16, 32>}]} {
    %c0_i32 = arith.constant 0 : i32
    %0 = arith.cmpi eq, %arg1, %c0_i32 : i32
    %1 = arith.extui %0 : i1 to i32
    %c0_i32_0 = arith.constant 0 : i32
    %2 = arith.cmpi ne, %1, %c0_i32_0 : i32
    scf.if %2 {
      %c0_16 = arith.constant 0 : index
      %c0_17 = arith.constant 0 : index
      %19 = vector.load %arg6[%c0_16, %c0_17] : memref<1x32xf32, #tpu.memory_space<vmem>>, vector<1x32xf32>
      %20 = vector.shape_cast %19 : vector<1x32xf32> to vector<1x32xf32>
      %21 = vector.broadcast %20 : vector<1x32xf32> to vector<16x32xf32>
      %c0_18 = arith.constant 0 : index
      %c0_19 = arith.constant 0 : index
      %22 = vector.load %arg8[%c0_18, %c0_19] : memref<16x32xf32, #tpu.memory_space<vmem>>, vector<16x32xf32>
      tpu.vector_store %arg8[%c0_18, %c0_19], %21 {strides = array<i32>} : memref<16x32xf32, #tpu.memory_space<vmem>>, vector<16x32xf32>,
    } else {
    }
    %c0 = arith.constant 0 : index
    %c0_1 = arith.constant 0 : index
    %3 = vector.load %arg2[%c0, %c0_1] : memref<16x32xf32, #tpu.memory_space<vmem>>, vector<16x32xf32>
    %c0_2 = arith.constant 0 : index
    %c0_3 = arith.constant 0 : index
    %4 = vector.load %arg3[%c0_2, %c0_3] : memref<32x64xf32, #tpu.memory_space<vmem>>, vector<32x64xf32>
    %cst = arith.constant dense<0.000000e+00> : vector<16x64xf32>
    %5 = tpu.matmul %3, %4, %cst {dimension_numbers = #tpu.dot_dimension_numbers<[1], [0], [0], [1], [0, 0, 1, 1], [], []>} : vector<16x32xf32>, vector<32x64xf32>, vector<16x64xf32> -> vector<16x64xf32>
    %c0_4 = arith.constant 0 : index
    %c0_5 = arith.constant 0 : index
    %6 = vector.load %arg4[%c0_4, %c0_5] : memref<1x64xf32, #tpu.memory_space<vmem>>, vector<1x64xf32>
    %7 = vector.broadcast %6 : vector<1x64xf32> to vector<16x64xf32>
    %8 = arith.addf %5, %7 : vector<16x64xf32>
    %cst_6 = arith.constant 0.000000e+00 : f32
    %9 = vector.broadcast %cst_6 : f32 to vector<16x64xf32>
    %10 = arith.maximumf %8, %9 : vector<16x64xf32>
    %c0_7 = arith.constant 0 : index
    %c0_8 = arith.constant 0 : index
    %11 = vector.load %arg8[%c0_7, %c0_8] : memref<16x32xf32, #tpu.memory_space<vmem>>, vector<16x32xf32>
    %c0_9 = arith.constant 0 : index
    %c0_10 = arith.constant 0 : index
    %12 = vector.load %arg5[%c0_9, %c0_10] : memref<64x32xf32, #tpu.memory_space<vmem>>, vector<64x32xf32>
    %cst_11 = arith.constant dense<0.000000e+00> : vector<16x32xf32>
    %13 = tpu.matmul %10, %12, %cst_11 {dimension_numbers = #tpu.dot_dimension_numbers<[1], [0], [0], [1], [0, 0, 1, 1], [], []>} : vector<16x64xf32>, vector<64x32xf32>, vector<16x32xf32> -> vector<16x32xf32>
    %14 = arith.addf %11, %13 : vector<16x32xf32>
    %c0_12 = arith.constant 0 : index
    %c0_13 = arith.constant 0 : index
    %15 = vector.load %arg8[%c0_12, %c0_13] : memref<16x32xf32, #tpu.memory_space<vmem>>, vector<16x32xf32>
    tpu.vector_store %arg8[%c0_12, %c0_13], %14 {strides = array<i32>} : memref<16x32xf32, #tpu.memory_space<vmem>>, vector<16x32xf32>,
    %c0_i32_14 = arith.constant 0 : i32
    %16 = arith.cmpi eq, %arg1, %c0_i32_14 : i32
    %17 = arith.extui %16 : i1 to i32
    %c0_i32_15 = arith.constant 0 : i32
    %18 = arith.cmpi ne, %17, %c0_i32_15 : i32
    scf.if %18 {
      %c0_16 = arith.constant 0 : index
      %c0_17 = arith.constant 0 : index
      %19 = vector.load %arg8[%c0_16, %c0_17] : memref<16x32xf32, #tpu.memory_space<vmem>>, vector<16x32xf32>
      %c0_18 = arith.constant 0 : index
      %c0_19 = arith.constant 0 : index
      %20 = vector.load %arg7[%c0_18, %c0_19] : memref<16x32xf32, #tpu.memory_space<vmem>>, vector<16x32xf32>
      tpu.vector_store %arg7[%c0_18, %c0_19], %19 {strides = array<i32>} : memref<16x32xf32, #tpu.memory_space<vmem>>, vector<16x32xf32>,
    } else {
    }
    return
  }
  func.func @transform_0(%arg0: i32, %arg1: i32) -> (i32, i32) {
    %c0_i32 = arith.constant 0 : i32
    %c0_i32_0 = arith.constant 0 : i32
    return %arg0, %c0_i32 : i32, i32
  }
  func.func @transform_1(%arg0: i32, %arg1: i32) -> (i32, i32) {
    %c0_i32 = arith.constant 0 : i32
    %c0_i32_0 = arith.constant 0 : i32
    return %c0_i32, %arg1 : i32, i32
  }
  func.func @transform_2(%arg0: i32, %arg1: i32) -> (i32, i32) {
    %c0_i32 = arith.constant 0 : i32
    %c0_i32_0 = arith.constant 0 : i32
    return %c0_i32, %arg1 : i32, i32
  }
  func.func @transform_3(%arg0: i32, %arg1: i32) -> (i32, i32) {
    %c0_i32 = arith.constant 0 : i32
    %c0_i32_0 = arith.constant 0 : i32
    return %arg1, %c0_i32 : i32, i32
  }
  func.func @transform_4(%arg0: i32, %arg1: i32) -> (i32, i32) {
    %c0_i32 = arith.constant 0 : i32
    %c0_i32_0 = arith.constant 0 : i32
    %c0_i32_1 = arith.constant 0 : i32
    return %c0_i32, %c0_i32_0 : i32, i32
  }
  func.func @transform_5(%arg0: i32, %arg1: i32) -> (i32, i32) {
    %c0_i32 = arith.constant 0 : i32
    %c0_i32_0 = arith.constant 0 : i32
    return %arg0, %c0_i32 : i32, i32
  }
}

</mosaic_0001>

<bundles_post_ra>
// kernel: tpu_custom_call.1
= control target key start
LH: loop header
LB: loop body
LE: loop exit
PB: predicated region body
PF: predicated region fallthrough
CT: control target
= control target key end

     0   :  { %vm32_vm0 = vcmask 261120   ;;  %s455_s0 = inlined_call_operand.vmem [shape: f32[16,32], index: 0, kind: input, shape index: {}]   ;;  %s456_s1 = inlined_call_operand.vmem [shape: f32[32,64], index: 1, kind: input, shape index: {}]   ;;  %s457_s2 = inlined_call_operand.vmem [shape: f32[1,64], index: 2, kind: input, shape index: {}]   ;;  %s458_s3 = inlined_call_operand.vmem [shape: f32[64,32], index: 3, kind: input, shape index: {}]   ;;  %s459_s4 = inlined_call_operand.vmem [shape: f32[1,32], index: 4, kind: input, shape index: {}]   ;;  %s460_s5 = inlined_call_operand.hbm [shape: f32[16,32], index: 5, kind: output, shape index: {}]  }
   0x1   :  { %v37_v0 = vld [vmem:[%s456_s1] sm:$0xff]  ;;  %v38_v1 = vld [vmem:[%s456_s1 + $0x8] sm:$0xff]  ;;  %v39_v2 = vld [vmem:[%s456_s1 + $0x10] sm:$0xff] }
   0x2   :  { %v303_v3 = vpack.c.bf16 %v38_v1, %v37_v0  ;;  %v40_v4 = vld [vmem:[%s456_s1 + $0x18] sm:$0xff]  ;;  %v35_v5 = vld [vmem:[%s455_s0] sm:$0xff]  ;;  %v135_v8 = vld [vmem:[%s458_s3 + $0x8] sm:$0xff] }
   0x3   :  { %v307_v6 = vpack.c.bf16 %v40_v4, %v39_v2  ;;  %281 = vmatprep.mubr.msk.f32.mxu0 %vm32_vm0, %v35_v5  ;;  %v134_v7 = vld [vmem:[%s458_s3] sm:$0xff]  ;;  %v136_v9 = vld [vmem:[%s458_s3 + $0x10] sm:$0xff]  ;;  %v137_v11 = vld [vmem:[%s458_s3 + $0x18] sm:$0xff] }
   0x4   :  { %304 = vmatprep.subr.bf16.mxu0 %v303_v3  ;;  %v311_v10 = vpack.c.bf16 %v135_v8, %v134_v7  ;;  %v315_v12 = vpack.c.bf16 %v137_v11, %v136_v9  ;;  %v138_v13 = vld [vmem:[%s458_s3 + $0x20] sm:$0xff]  ;;  %v139_v14 = vld [vmem:[%s458_s3 + $0x28] sm:$0xff] }
   0x5   :  { %306 = vmatpush3.bf16.msra.mxu0 %v303_v3 }
   0x6   :  { %10 = vsyncpa [#allocation4], 0  ;;  %308 = vmatprep.subr.bf16.mxu0 %v307_v6  ;;  %312 = vmatprep.subr.bf16.mxu1 %v311_v10  ;;  %v319_v15 = vpack.c.bf16 %v139_v14, %v138_v13  ;;  %v36_v16 = vld [vmem:[%s455_s0 + $0x8] sm:$0xff]  ;;  %v140_v17 = vld [vmem:[%s458_s3 + $0x30] sm:$0xff]  ;;  %vm142_vm1 = vcmask 523264  }
   0x7   :  { %314 = vmatpush3.bf16.msra.mxu1 %v311_v10  ;;  %v141_v18 = vld [vmem:[%s458_s3 + $0x38] sm:$0xff]  ;;  %v251_v20 = vld [vmem:[%s459_s4] ss:$0 sm:$0xff] }
   0x8   :  { %316 = vmatprep.subr.bf16.mxu1 %v315_v12  ;;  %v323_v19 = vpack.c.bf16 %v141_v18, %v140_v17  ;;  %34 = vst.msk [vmem:[#allocation2 + $0x8] sm:$0xff] %vm32_vm0, %v251_v20  ;;  %33 = vst.msk [vmem:[#allocation2] sm:$0xff] %vm32_vm0, %v251_v20  ;;  %v252_v21 = vld [vmem:[%s457_s2] ss:$0 sm:$0xff]  ;;  %s354_s2 = smov [#allocation3]  }
   0x9   :  { %310 = vmatpush3.bf16.msra.mxu0 %v307_v6  ;;  %s240_s3 = sshll.u32 %s354_s2, 4  ;;  %s241_s3 = int_to_ptr.vmem [resolvable:$true] %s240_s3 }
   0xa   :  { %s330_s4 = scalar_lea.vmem %s241_s3, 256  ;;  %p335_p1 = scmp.lt.s32.totalorder %s241_s3, %s241_s3 }
   0xb   :  { %318 = vmatpush3.bf16.msra.mxu1 %v315_v12  ;;  %p331_p0 = scmp.ne.s32.totalorder %s241_s3, %s330_s4  ;;  %p336_p2 = scmp.lt.s32.totalorder %s330_s4, %s330_s4 }
   0xc   :  { %282 = vmatmul.mubr.msk.f32.vlgmr.msra.gmra.mrb[0].mxu0 %vm32_vm0, %v36_v16  ;;  %320 = vmatprep.subr.bf16.mxu1 %v319_v15 }
   0xd   :  { %p337_p3 = por %p336_p2, %p335_p1 }
   0xf   :  { %322 = vmatpush3.bf16.msra.mxu1 %v319_v15  ;;  %v133_v28 = vld [vmem:[#allocation2 + $0x8] sm:$0xff]  ;;  %v132_v29 = vld [vmem:[#allocation2] sm:$0xff]  ;;  %p338_p4 = pnand %p337_p3, %p331_p0 }
  0x10   :  { %324 = vmatprep.subr.bf16.mxu1 %v323_v19 }
  0x13   :  { %326 = vmatpush3.bf16.msra.mxu1 %v323_v19 }
  0xdf   :  { %v283_v22 = vpop.f32.mrb[0].mxu0 }
  0xe0   :  { %v127_v23 = vadd.f32 %v283_v22, %v252_v21  ;;  %v121_v24 = vpop.f32.mrb[1].mxu0 }
  0xe1   :  { %v122_v25 = vadd.f32 %v252_v21, %v121_v24 }
  0xe2   :  { %v131_v27 = vmax.f32 %v127_v23, 0.0 }
  0xe3   :  { %v130_v26 = vmax.f32 %v122_v25, 0.0 }
  0xe5   :  { %300 = vmatprep.mubr.msk.f32.mxu1 %vm142_vm1, %v130_v26 }
  0xe6   :  { %301 = vmatmul.mubr.msk.f32.vlgmr.msra.gmra.mrb[0].mxu1 %vm142_vm1, %v131_v27 }
 0x1b9   :  { %v302_v30 = vpop.f32.mrb[0].mxu1 }
 0x1ba   :  { %v225_v31 = vadd.f32 %v302_v30, %v133_v28  ;;  %v215_v32 = vpop.f32.mrb[1].mxu1 }
 0x1bb   :  { %v224_v33 = vadd.f32 %v215_v32, %v132_v29 }
 0x1bc   :  { %227 = vst.msk [vmem:[#allocation2 + $0x8] sm:$0xff] %vm32_vm0, %v225_v31 }
 0x1bd   :  { %226 = vst.msk [vmem:[#allocation2] sm:$0xff] %vm32_vm0, %v224_v33 }
 0x1c3   :  { %v232_v34 = vld [vmem:[#allocation2 + $0x8] sm:$0xff] }
 0x1c4   :  { %v231_v35 = vld [vmem:[#allocation2] sm:$0xff]  ;;  %234 = vst.msk [vmem:[#allocation3 + $0x8] sm:$0xff] %vm32_vm0, %v232_v34 }
 0x1c5   :  { %233 = vst.msk [vmem:[#allocation3] sm:$0xff] %vm32_vm0, %v231_v35 }
 0x1c6   :  { %341 = shalt.err (!%p338_p4)
}
 0x1c7   :  { %s342_s25 = scalar_lea.hbm %s460_s5, 256 }
 0x1c8   :  { %p343_p5 = scmp.ne.s32.totalorder %s460_s5, %s342_s25  ;;  %p346_p6 = scmp.lt.u32.totalorder %s342_s25, %s460_s5 }
 0x1ca   :  { %p348_p7 = pnand %p346_p6, %p343_p5 }
 0x1cc   :  { %351 = shalt.err (!%p348_p7)
}
 0x1cd   :  { %s355_s30 = smov 128   ;;  %s356_s6 = smov 8  }
 0x1ce   :  { %246 = dma.vmem_to_hbm [thread:$0]  %s241_s3, 256, %s460_s5, [#allocation4], %s355_s30, %s355_s30, %s356_s6  }
 0x1cf   :  { %352 = dma.done.wait [#allocation4], 256  }
 0x1d0   :  { %353 = vsyncadd [#allocation4], 4294967040 }
 0x1d1   :  { %250 = vsyncpa [#allocation4], 1 }

</bundles_post_ra>
